<compile_context>
chip_gen: v7x
topology: tpu7x:2x2x1
jax: 0.10.0
libtpu: 0.0.40
codegen_flags: <defaults>
</compile_context>

<pallas_src>
import functools

import jax
import jax.numpy as jnp
from jax.experimental import pallas as pl
from jax.experimental.pallas import tpu as pltpu


HIDDEN = 128


# ---------------------------------------------------------------------------
# Fused kernel: features -> all heads in one pass
# ---------------------------------------------------------------------------
def fused_kernel(x_ref, w1_ref, b1_ref, w2_ref, b2_ref, wh_ref, bh_ref,
                 out_ref, *, total_bins, n_heads):
    # x: (TB, obs), w1: (obs, 128), w2: (128, 128), wh: (128, OUT_P)
    cd = w1_ref.dtype  # compute dtype for MXU inputs (f32 or bf16)

    x = x_ref[...].astype(cd)          # cast in-kernel (no extra HBM pass)
    h = jnp.dot(x, w1_ref[...], preferred_element_type=jnp.float32)
    h = jnp.maximum(h + b1_ref[...], 0.0)                      # f32 ReLU

    f = jnp.dot(h.astype(cd), w2_ref[...], preferred_element_type=jnp.float32)
    f = jnp.maximum(f + b2_ref[...], 0.0)                      # f32 ReLU

    y = jnp.dot(f.astype(cd), wh_ref[...], preferred_element_type=jnp.float32)
    y = y + bh_ref[...]                                        # f32 bias

    # Columns [0, total_bins)                  -> raw q values
    # Columns [total_bins, total_bins+n_heads) -> sigmoid (duration heads)
    # Columns beyond that are zero padding (zero weights/bias) and discarded.
    # Mask is built at (1, OUT_P) and broadcast by the where (no full-tile
    # iota/compare VPU filler per step).
    col = jax.lax.broadcasted_iota(jnp.int32, (1, y.shape[1]), 1)
    sig_mask = (col >= total_bins) & (col < total_bins + n_heads)
    out_ref[...] = jnp.where(sig_mask, jax.nn.sigmoid(y), y).astype(out_ref.dtype)


# ---------------------------------------------------------------------------
# Wrapper
# ---------------------------------------------------------------------------
def _round_up(n, m):
    return ((n + m - 1) // m) * m


@functools.partial(jax.jit,
                   static_argnames=("total_bins", "n_heads", "out_dtype"))
def branching_dqn_forward(x, w1, b1, w2, b2, wh, bh, *,
                          total_bins, n_heads, out_dtype=jnp.float32):
    """Returns the padded, concatenated (B, OUT_P) head output."""
    B, obs = x.shape
    out_p = wh.shape[1]

    # Only the degenerate tiny-batch case is padded (so the 8-row sublane
    # block never exceeds the array); everything else relies on Pallas'
    # ragged last-tile handling — no wrapper-side HBM pad pass.
    if B < 8:
        x = jnp.pad(x, ((0, 8 - B), (0, 0)))
    rows = x.shape[0]

    # Batch tile: big tiles (fewer ~0.35us grid steps), but >=2 grid steps
    # whenever the batch allows it so v7x's two TensorCores both get work.
    tb = min(1024, _round_up(max(pl.cdiv(rows, 2), 8), 8))
    grid = (pl.cdiv(rows, tb),)

    weight_bytes = sum(int(a.size) * a.dtype.itemsize
                       for a in (w1, b1, w2, b2, wh, bh))
    cost = pl.CostEstimate(
        flops=2 * rows * (obs * HIDDEN + HIDDEN * HIDDEN + HIDDEN * out_p),
        transcendentals=rows * out_p,
        bytes_accessed=(rows * obs * x.dtype.itemsize
                        + rows * out_p * jnp.dtype(out_dtype).itemsize
                        + weight_bytes),
    )

    kernel = functools.partial(fused_kernel,
                               total_bins=total_bins, n_heads=n_heads)

    out = pl.pallas_call(
        kernel,
        out_shape=jax.ShapeDtypeStruct((rows, out_p), out_dtype),
        grid_spec=pltpu.PrefetchScalarGridSpec(
            num_scalar_prefetch=0,
            grid=grid,
            in_specs=[
                pl.BlockSpec((tb, obs), lambda i: (i, 0)),   # activations: tiled
                pl.BlockSpec(w1.shape, lambda i: (0, 0)),    # weights: resident
                pl.BlockSpec(b1.shape, lambda i: (0, 0)),
                pl.BlockSpec(w2.shape, lambda i: (0, 0)),
                pl.BlockSpec(b2.shape, lambda i: (0, 0)),
                pl.BlockSpec(wh.shape, lambda i: (0, 0)),
                pl.BlockSpec(bh.shape, lambda i: (0, 0)),
            ],
            out_specs=pl.BlockSpec((tb, out_p), lambda i: (i, 0)),
        ),
        compiler_params=pltpu.CompilerParams(
            dimension_semantics=("parallel",)),
        cost_estimate=cost,
    )(x, w1, b1, w2, b2, wh, bh)

    return out[:B]


class BranchingQNetworkPallas:
    """Pallas TPU port of BranchingQNetwork.forward.

    compute_dtype: MXU-input dtype. Recommended bf16 on v6e/v7x, f32 on v5e.
    out_dtype:     dtype of the head-output slab written to HBM (bf16 halves
                   the dominant writeback stream at large batches).
    """

    def __init__(self, obs_size, action_bins, key,
                 compute_dtype=jnp.float32, out_dtype=jnp.float32):
        self.obs_size = obs_size
        self.action_bins = tuple(action_bins)
        self.n_heads = len(self.action_bins)
        self.total_bins = int(sum(self.action_bins))
        self.compute_dtype = compute_dtype
        self.out_dtype = out_dtype
        # lane-dense padded output width (q heads + duration heads, padded)
        self.out_p = _round_up(self.total_bins + self.n_heads, 128)

        keys = jax.random.split(key, 2 + 2 * self.n_heads)

        def linear_init(k, fan_in, fan_out):
            # PyTorch nn.Linear default: U(-1/sqrt(fan_in), 1/sqrt(fan_in))
            kw, kb = jax.random.split(k)
            bound = 1.0 / jnp.sqrt(jnp.float32(fan_in))
            w = jax.random.uniform(kw, (fan_in, fan_out), jnp.float32,
                                   minval=-bound, maxval=bound)
            b = jax.random.uniform(kb, (1, fan_out), jnp.float32,
                                   minval=-bound, maxval=bound)
            return w, b

        # feature extractor: Linear(obs,128) -> ReLU -> Linear(128,128) -> ReLU
        w1, self.b1 = linear_init(keys[0], obs_size, HIDDEN)
        w2, self.b2 = linear_init(keys[1], HIDDEN, HIDDEN)

        # q heads (Linear(128, bins_i)) + duration heads (Linear(128, 1)),
        # all concatenated along the output axis into one head matrix.
        ws, bs = [], []
        for i, bins in enumerate(self.action_bins):
            w, b = linear_init(keys[2 + i], HIDDEN, bins)
            ws.append(w)
            bs.append(b)
        for i in range(self.n_heads):
            w, b = linear_init(keys[2 + self.n_heads + i], HIDDEN, 1)
            ws.append(w)
            bs.append(b)
        wh = jnp.concatenate(ws, axis=1)   # (128, total_bins + n_heads)
        bh = jnp.concatenate(bs, axis=1)   # (1,   total_bins + n_heads)

        # zero-pad heads to a lane-dense (multiple of 128) output
        pad = self.out_p - (self.total_bins + self.n_heads)
        wh = jnp.pad(wh, ((0, 0), (0, pad)))
        bh = jnp.pad(bh, ((0, 0), (0, pad)))

        # MXU-input weights in the compute dtype; biases stay f32.
        self.w1 = w1.astype(compute_dtype)
        self.w2 = w2.astype(compute_dtype)
        self.wh = wh.astype(compute_dtype)
        self.bh = bh

    def forward_concat(self, x):
        """Jit-friendly form: returns (q_cat (B,total_bins), d_cat (B,n_heads))."""
        out = branching_dqn_forward(
            x, self.w1, self.b1, self.w2, self.b2, self.wh, self.bh,
            total_bins=self.total_bins, n_heads=self.n_heads,
            out_dtype=self.out_dtype)
        q_cat = out[:, :self.total_bins]
        d_cat = out[:, self.total_bins:self.total_bins + self.n_heads]
        return q_cat, d_cat

    def __call__(self, x):
        # list-of-heads structure matching the PyTorch module
        q_cat, d_cat = self.forward_concat(x)
        q_values, off = [], 0
        for bins in self.action_bins:
            q_values.append(q_cat[:, off:off + bins])
            off += bins
        durations = [d_cat[:, i:i + 1] for i in range(self.n_heads)]
        return q_values, durations


# ---------------------------------------------------------------------------
# Reference (pure JAX, f32) for a sanity check
# ---------------------------------------------------------------------------
def reference_forward(net, x):
    w1 = net.w1.astype(jnp.float32)
    w2 = net.w2.astype(jnp.float32)
    wh = net.wh.astype(jnp.float32)
    x = x.astype(jnp.float32)
    h = jnp.maximum(x @ w1 + net.b1, 0.0)
    f = jnp.maximum(h @ w2 + net.b2, 0.0)
    y = f @ wh + net.bh
    q_cat = y[:, :net.total_bins]
    d_cat = jax.nn.sigmoid(y[:, net.total_bins:net.total_bins + net.n_heads])
    q_values, off = [], 0
    for bins in net.action_bins:
        q_values.append(q_cat[:, off:off + bins])
        off += bins
    durations = [d_cat[:, i:i + 1] for i in range(net.n_heads)]
    return q_values, durations


def _check(net, x, atol, rtol):
    q_values, durations = net(x)
    jax.block_until_ready(q_values)
    jax.block_until_ready(durations)
    q_ref, d_ref = reference_forward(net, x)
    for qa, qb in zip(q_values, q_ref):
        assert qa.shape == qb.shape
        assert jnp.allclose(qa.astype(jnp.float32), qb, atol=atol, rtol=rtol), \
            "q mismatch"
    for da, db in zip(durations, d_ref):
        assert da.shape == db.shape
        assert jnp.allclose(da.astype(jnp.float32), db, atol=atol, rtol=rtol), \
            "duration mismatch"


if __name__ == "__main__":
    key = jax.random.PRNGKey(0)
    k_param, k_x1, k_x2 = jax.random.split(key, 3)

    obs_size = 32
    action_bins = (4, 6, 8)

    # f32 network, small batch (B=4 < 8 triggers the degenerate tiny pad)
    net = BranchingQNetworkPallas(obs_size, action_bins, k_param)
    x_small = jax.random.normal(k_x1, (4, obs_size), dtype=jnp.float32)
    _check(net, x_small, atol=1e-5, rtol=1e-5)

    # larger, non-multiple-of-8 batch exercises the ragged last tile and the
    # 2-step batch grid (tb=504, grid=(2,))
    x_big = jax.random.normal(k_x2, (1000, obs_size), dtype=jnp.float32)
    _check(net, x_big, atol=1e-5, rtol=1e-5)

    # bf16 MXU inputs + bf16 output slab, f32 accumulation
    # (v6e/v7x throughput path; keep f32 on v5e)
    net_bf16 = BranchingQNetworkPallas(obs_size, action_bins, k_param,
                                       compute_dtype=jnp.bfloat16,
                                       out_dtype=jnp.bfloat16)
    _check(net_bf16, x_small, atol=3e-2, rtol=3e-2)
    _check(net_bf16, x_big, atol=3e-2, rtol=3e-2)

    print("KERNEL_OK")
</pallas_src>

<mosaic_0001>
module attributes {stable_mosaic.version = 11 : i64} {
  func.func @fused_kernel(%arg0: i32, %arg1: memref<8x32xf32, #tpu.memory_space<vmem>>, %arg2: memref<32x128xf32, #tpu.memory_space<vmem>>, %arg3: memref<1x128xf32, #tpu.memory_space<vmem>>, %arg4: memref<128x128xf32, #tpu.memory_space<vmem>>, %arg5: memref<1x128xf32, #tpu.memory_space<vmem>>, %arg6: memref<128x128xf32, #tpu.memory_space<vmem>>, %arg7: memref<1x128xf32, #tpu.memory_space<vmem>>, %arg8: memref<8x128xf32, #tpu.memory_space<vmem>>) attributes {dimension_semantics = [#tpu.dimension_semantics<parallel>], iteration_bounds = array<i64: 1>, scalar_prefetch = 0 : i64, scratch_operands = 0 : i64, tpu.core_type = #tpu.core_type<tc>, window_params = [{transform_indices = @transform_0, window_bounds = array<i64: 8, 32>}, {pipeline_mode = #tpu.pipeline_mode<synchronous>, transform_indices = @transform_1, window_bounds = array<i64: 32, 128>}, {pipeline_mode = #tpu.pipeline_mode<synchronous>, transform_indices = @transform_2, window_bounds = array<i64: 1, 128>}, {pipeline_mode = #tpu.pipeline_mode<synchronous>, transform_indices = @transform_3, window_bounds = array<i64: 128, 128>}, {pipeline_mode = #tpu.pipeline_mode<synchronous>, transform_indices = @transform_4, window_bounds = array<i64: 1, 128>}, {pipeline_mode = #tpu.pipeline_mode<synchronous>, transform_indices = @transform_5, window_bounds = array<i64: 128, 128>}, {pipeline_mode = #tpu.pipeline_mode<synchronous>, transform_indices = @transform_6, window_bounds = array<i64: 1, 128>}, {transform_indices = @transform_7, window_bounds = array<i64: 8, 128>}]} {
    %c0 = arith.constant 0 : index
    %c0_0 = arith.constant 0 : index
    %0 = vector.load %arg1[%c0, %c0_0] : memref<8x32xf32, #tpu.memory_space<vmem>>, vector<8x32xf32>
    %c0_1 = arith.constant 0 : index
    %c0_2 = arith.constant 0 : index
    %1 = vector.load %arg2[%c0_1, %c0_2] : memref<32x128xf32, #tpu.memory_space<vmem>>, vector<32x128xf32>
    %cst = arith.constant dense<0.000000e+00> : vector<8x128xf32>
    %2 = tpu.matmul %0, %1, %cst {dimension_numbers = #tpu.dot_dimension_numbers<[1], [0], [0], [1], [0, 0, 1, 1], [], []>} : vector<8x32xf32>, vector<32x128xf32>, vector<8x128xf32> -> vector<8x128xf32>
    %c0_3 = arith.constant 0 : index
    %c0_4 = arith.constant 0 : index
    %3 = vector.load %arg3[%c0_3, %c0_4] : memref<1x128xf32, #tpu.memory_space<vmem>>, vector<1x128xf32>
    %4 = vector.broadcast %3 : vector<1x128xf32> to vector<8x128xf32>
    %5 = arith.addf %2, %4 : vector<8x128xf32>
    %cst_5 = arith.constant 0.000000e+00 : f32
    %6 = vector.broadcast %cst_5 : f32 to vector<8x128xf32>
    %7 = arith.maximumf %5, %6 : vector<8x128xf32>
    %c0_6 = arith.constant 0 : index
    %c0_7 = arith.constant 0 : index
    %8 = vector.load %arg4[%c0_6, %c0_7] : memref<128x128xf32, #tpu.memory_space<vmem>>, vector<128x128xf32>
    %cst_8 = arith.constant dense<0.000000e+00> : vector<8x128xf32>
    %9 = tpu.matmul %7, %8, %cst_8 {dimension_numbers = #tpu.dot_dimension_numbers<[1], [0], [0], [1], [0, 0, 1, 1], [], []>} : vector<8x128xf32>, vector<128x128xf32>, vector<8x128xf32> -> vector<8x128xf32>
    %c0_9 = arith.constant 0 : index
    %c0_10 = arith.constant 0 : index
    %10 = vector.load %arg5[%c0_9, %c0_10] : memref<1x128xf32, #tpu.memory_space<vmem>>, vector<1x128xf32>
    %11 = vector.broadcast %10 : vector<1x128xf32> to vector<8x128xf32>
    %12 = arith.addf %9, %11 : vector<8x128xf32>
    %cst_11 = arith.constant 0.000000e+00 : f32
    %13 = vector.broadcast %cst_11 : f32 to vector<8x128xf32>
    %14 = arith.maximumf %12, %13 : vector<8x128xf32>
    %c0_12 = arith.constant 0 : index
    %c0_13 = arith.constant 0 : index
    %15 = vector.load %arg6[%c0_12, %c0_13] : memref<128x128xf32, #tpu.memory_space<vmem>>, vector<128x128xf32>
    %cst_14 = arith.constant dense<0.000000e+00> : vector<8x128xf32>
    %16 = tpu.matmul %14, %15, %cst_14 {dimension_numbers = #tpu.dot_dimension_numbers<[1], [0], [0], [1], [0, 0, 1, 1], [], []>} : vector<8x128xf32>, vector<128x128xf32>, vector<8x128xf32> -> vector<8x128xf32>
    %c0_15 = arith.constant 0 : index
    %c0_16 = arith.constant 0 : index
    %17 = vector.load %arg7[%c0_15, %c0_16] : memref<1x128xf32, #tpu.memory_space<vmem>>, vector<1x128xf32>
    %18 = vector.broadcast %17 : vector<1x128xf32> to vector<8x128xf32>
    %19 = arith.addf %16, %18 : vector<8x128xf32>
    %20 = tpu.iota {dimensions = array<i32: 1>} : vector<1x128xi32>
    %c18_i32 = arith.constant 18 : i32
    %21 = vector.broadcast %c18_i32 : i32 to vector<1x128xi32>
    %22 = arith.cmpi sge, %20, %21 : vector<1x128xi32>
    %c21_i32 = arith.constant 21 : i32
    %23 = vector.broadcast %c21_i32 : i32 to vector<1x128xi32>
    %24 = arith.cmpi slt, %20, %23 : vector<1x128xi32>
    %25 = arith.andi %22, %24 : vector<1x128xi1>
    %26 = arith.negf %19 : vector<8x128xf32>
    %27 = math.exp %26 : vector<8x128xf32>
    %cst_17 = arith.constant 1.000000e+00 : f32
    %28 = vector.broadcast %cst_17 : f32 to vector<8x128xf32>
    %29 = arith.addf %28, %27 : vector<8x128xf32>
    %30 = arith.divf %28, %29 : vector<8x128xf32>
    %31 = vector.shape_cast %25 : vector<1x128xi1> to vector<1x128xi1>
    %32 = vector.broadcast %31 : vector<1x128xi1> to vector<8x128xi1>
    %33 = arith.select %32, %30, %19 : vector<8x128xi1>, vector<8x128xf32>
    %c0_18 = arith.constant 0 : index
    %c0_19 = arith.constant 0 : index
    %34 = vector.load %arg8[%c0_18, %c0_19] : memref<8x128xf32, #tpu.memory_space<vmem>>, vector<8x128xf32>
    tpu.vector_store %arg8[%c0_18, %c0_19], %33 {strides = array<i32>} : memref<8x128xf32, #tpu.memory_space<vmem>>, vector<8x128xf32>,
    return
  }
  func.func @transform_0(%arg0: i32) -> (i32, i32) {
    %c0_i32 = arith.constant 0 : i32
    %c0_i32_0 = arith.constant 0 : i32
    return %arg0, %c0_i32 : i32, i32
  }
  func.func @transform_1(%arg0: i32) -> (i32, i32) {
    %c0_i32 = arith.constant 0 : i32
    %c0_i32_0 = arith.constant 0 : i32
    %c0_i32_1 = arith.constant 0 : i32
    return %c0_i32, %c0_i32_0 : i32, i32
  }
  func.func @transform_2(%arg0: i32) -> (i32, i32) {
    %c0_i32 = arith.constant 0 : i32
    %c0_i32_0 = arith.constant 0 : i32
    %c0_i32_1 = arith.constant 0 : i32
    return %c0_i32, %c0_i32_0 : i32, i32
  }
  func.func @transform_3(%arg0: i32) -> (i32, i32) {
    %c0_i32 = arith.constant 0 : i32
    %c0_i32_0 = arith.constant 0 : i32
    %c0_i32_1 = arith.constant 0 : i32
    return %c0_i32, %c0_i32_0 : i32, i32
  }
  func.func @transform_4(%arg0: i32) -> (i32, i32) {
    %c0_i32 = arith.constant 0 : i32
    %c0_i32_0 = arith.constant 0 : i32
    %c0_i32_1 = arith.constant 0 : i32
    return %c0_i32, %c0_i32_0 : i32, i32
  }
  func.func @transform_5(%arg0: i32) -> (i32, i32) {
    %c0_i32 = arith.constant 0 : i32
    %c0_i32_0 = arith.constant 0 : i32
    %c0_i32_1 = arith.constant 0 : i32
    return %c0_i32, %c0_i32_0 : i32, i32
  }
  func.func @transform_6(%arg0: i32) -> (i32, i32) {
    %c0_i32 = arith.constant 0 : i32
    %c0_i32_0 = arith.constant 0 : i32
    %c0_i32_1 = arith.constant 0 : i32
    return %c0_i32, %c0_i32_0 : i32, i32
  }
  func.func @transform_7(%arg0: i32) -> (i32, i32) {
    %c0_i32 = arith.constant 0 : i32
    %c0_i32_0 = arith.constant 0 : i32
    return %arg0, %c0_i32 : i32, i32
  }
}

</mosaic_0001>

<bundles_post_ra>
// kernel: branching_dqn_forward.1
= control target key start
LH: loop header
LB: loop body
LE: loop exit
PB: predicated region body
PF: predicated region fallthrough
CT: control target
= control target key end

     0   :  { %12 = vsyncpa [#allocation3], 0  ;;  %s759_s0 = inlined_call_operand.vmem [shape: f32[8,32], index: 0, kind: input, shape index: {}]   ;;  %s760_s1 = inlined_call_operand.hbm [shape: f32[32,128], index: 1, kind: input, shape index: {}]   ;;  %s761_s2 = inlined_call_operand.vmem [shape: f32[1,128], index: 2, kind: input, shape index: {}]   ;;  %s762_s3 = inlined_call_operand.hbm [shape: f32[128,128], index: 3, kind: input, shape index: {}]   ;;  %s763_s4 = inlined_call_operand.vmem [shape: f32[1,128], index: 4, kind: input, shape index: {}]   ;;  %s764_s5 = inlined_call_operand.hbm [shape: f32[128,128], index: 5, kind: input, shape index: {}]   ;;  %s765_s6 = inlined_call_operand.vmem [shape: f32[1,128], index: 6, kind: input, shape index: {}]   ;;  %s766_s7 = inlined_call_operand.vmem [shape: f32[8,128], index: 7, kind: output, shape index: {}]  }
   0x1   :  { %13 = vsyncpa [#allocation5], 0  ;;  %s623_s24 = smov [#allocation4]   ;;  %s624_s26 = smov [#allocation2]  }
   0x2   :  { %s35_s25 = sshll.u32 %s623_s24, 4  ;;  %s21_s27 = sshll.u32 %s624_s26, 4  ;;  %s36_s25 = int_to_ptr.vmem [resolvable:$true] %s35_s25  ;;  %s671_s27 = int_to_ptr.vmem [resolvable:$true] %s21_s27 }
   0x3   :  { %s553_s30 = scalar_lea.hbm %s762_s3, 2048 }
   0x4   :  { %p554_p0 = scmp.ne.s32.totalorder %s762_s3, %s553_s30  ;;  %p557_p1 = scmp.lt.u32.totalorder %s553_s30, %s762_s3 }
   0x6   :  { %p559_p2 = pnand %p557_p1, %p554_p0 }
   0x8   :  { %562 = shalt.err (!%p559_p2)
}
   0x9   :  { %s563_s12 = scalar_lea.vmem %s36_s25, 2048  ;;  %p568_p4 = scmp.lt.s32.totalorder %s36_s25, %s36_s25 }
   0xa   :  { %p564_p3 = scmp.ne.s32.totalorder %s36_s25, %s563_s12  ;;  %p569_p5 = scmp.lt.s32.totalorder %s563_s12, %s563_s12 }
   0xc   :  { %p570_p6 = por %p569_p5, %p568_p4 }
   0xe   :  { %p571_p7 = pnand %p570_p6, %p564_p3 }
  0x10   :  { %574 = shalt.err (!%p571_p7)
}
  0x11   :  { %s625_s13 = smov 128   ;;  %s626_s14 = smov 8  }
  0x12   :  { %41 = dma.hbm_to_vmem [thread:$0]  %s762_s3, 2048, %s36_s25, [#allocation5], %s625_s13, %s625_s13, %s626_s14  }
  0x13   :  { %s575_s19 = scalar_lea.hbm %s760_s1, 512 }
  0x14   :  { %p576_p8 = scmp.ne.s32.totalorder %s760_s1, %s575_s19  ;;  %p579_p9 = scmp.lt.u32.totalorder %s575_s19, %s760_s1 }
  0x16   :  { %p581_p10 = pnand %p579_p9, %p576_p8 }
  0x18   :  { %584 = shalt.err (!%p581_p10)
}
  0x19   :  { %s585_s24 = scalar_lea.vmem %s671_s27, 512  ;;  %p590_p12 = scmp.lt.s32.totalorder %s671_s27, %s671_s27 }
  0x1a   :  { %p586_p11 = scmp.ne.s32.totalorder %s671_s27, %s585_s24  ;;  %p591_p13 = scmp.lt.s32.totalorder %s585_s24, %s585_s24 }
  0x1c   :  { %p592_p0 = por %p591_p13, %p590_p12 }
  0x1e   :  { %p593_p1 = pnand %p592_p0, %p586_p11 }
  0x20   :  { %596 = shalt.err (!%p593_p1)
}
  0x21   :  { %27 = dma.hbm_to_vmem [thread:$0]  %s760_s1, 512, %s671_s27, [#allocation3], %s625_s13, %s625_s13, %s626_s14  }
  0x22   :  { %s627_s26 = smov [#allocation6]   ;;  %s597_s8 = scalar_lea.hbm %s764_s5, 2048 }
  0x23   :  { %s49_s28 = sshll.u32 %s627_s26, 4  ;;  %p598_p2 = scmp.ne.s32.totalorder %s764_s5, %s597_s8  ;;  %s50_s28 = int_to_ptr.vmem [resolvable:$true] %s49_s28 }
  0x24   :  { %p601_p3 = scmp.lt.u32.totalorder %s597_s8, %s764_s5 }
  0x26   :  { %p603_p4 = pnand %p601_p3, %p598_p2 }
  0x28   :  { %606 = shalt.err (!%p603_p4)
}
  0x29   :  { %s607_s15 = scalar_lea.vmem %s50_s28, 2048  ;;  %p612_p6 = scmp.lt.s32.totalorder %s50_s28, %s50_s28 }
  0x2a   :  { %p608_p5 = scmp.ne.s32.totalorder %s50_s28, %s607_s15  ;;  %p613_p7 = scmp.lt.s32.totalorder %s607_s15, %s607_s15 }
  0x2c   :  { %p614_p8 = por %p613_p7, %p612_p6 }
  0x2e   :  { %p615_p9 = pnand %p614_p8, %p608_p5 }
  0x30   :  { %618 = shalt.err (!%p615_p9)
}
  0x31   :  { %55 = dma.hbm_to_vmem [thread:$0]  %s764_s5, 2048, %s50_s28, [#allocation5], %s625_s13, %s625_s13, %s626_s14  }
  0x32   :  { %619 = dma.done.wait [#allocation3], 512  }
  0x33   :  { %620 = vsyncadd [#allocation3], 4294966784 }
  0x34   :  { %621 = dma.done.wait [#allocation5], 4096  }
  0x35   :  { %622 = vsyncadd [#allocation5], 4294963200  ;;  %v628_v0 = vmov 0.0|0.0   ;;  %vm629_vm0 = vmmov 0   ;;  %v630_v1 = vmov 0.0   ;;  %v68_v2 = vld [vmem:[#allocation2] sm:$0xff] }
  0x36   :  { %487 = vmatprep.subr.bf16.mxu0 %v628_v0  ;;  %414 = vmatprep.mubr.msk.f32.mxu0 %vm629_vm0, %v630_v1  ;;  %v69_v3 = vld [vmem:[#allocation2 + $0x8] sm:$0xff]  ;;  %v70_v4 = vld [vmem:[#allocation2 + $0x10] sm:$0xff]  ;;  %v71_v6 = vld [vmem:[#allocation2 + $0x18] sm:$0xff]  ;;  %vm79_vm1 = vcmask 261120  }
  0x37   :  { %493 = vmatprep.subr.bf16.mxu1 %v628_v0  ;;  %449 = vmatprep.mubr.msk.f32.mxu1 %vm629_vm0, %v630_v1  ;;  %v488_v5 = vpack.c.bf16 %v69_v3, %v68_v2  ;;  %v154_v7 = vld [vmem:[#allocation4] sm:$0xff]  ;;  %v155_v8 = vld [vmem:[#allocation4 + $0x8] sm:$0xff]  ;;  %v156_v9 = vld [vmem:[#allocation4 + $0x10] sm:$0xff]  ;;  %v491_v11 = vpack.c.bf16 %v71_v6, %v70_v4 }
  0x38   :  { %v157_v10 = vld [vmem:[#allocation4 + $0x18] sm:$0xff]  ;;  %v494_v12 = vpack.c.bf16 %v155_v8, %v154_v7  ;;  %v158_v14 = vld [vmem:[#allocation4 + $0x20] sm:$0xff]  ;;  %v159_v15 = vld [vmem:[#allocation4 + $0x28] sm:$0xff] }
  0x39   :  { %489 = vmatpush3.bf16.msra.mxu0 %v488_v5  ;;  %v497_v13 = vpack.c.bf16 %v157_v10, %v156_v9  ;;  %v67_v16 = vld [vmem:[%s759_s0] sm:$0xff]  ;;  %v500_v17 = vpack.c.bf16 %v159_v15, %v158_v14  ;;  %v160_v18 = vld [vmem:[#allocation4 + $0x30] sm:$0xff]  ;;  %v161_v19 = vld [vmem:[#allocation4 + $0x38] sm:$0xff]  ;;  %v341_v9 = vlaneseq }
  0x3a   :  { %490 = vmatprep.subr.bf16.mxu0 %v628_v0  ;;  %495 = vmatpush3.bf16.msra.mxu1 %v494_v12  ;;  %v503_v20 = vpack.c.bf16 %v161_v19, %v160_v18  ;;  %v162_v21 = vld [vmem:[#allocation4 + $0x40] sm:$0xff]  ;;  %v163_v22 = vld [vmem:[#allocation4 + $0x48] sm:$0xff]  ;;  %v164_v24 = vld [vmem:[#allocation4 + $0x50] sm:$0xff] }
  0x3b   :  { %496 = vmatprep.subr.bf16.mxu1 %v628_v0  ;;  %v506_v23 = vpack.c.bf16 %v163_v22, %v162_v21  ;;  %v165_v25 = vld [vmem:[#allocation4 + $0x58] sm:$0xff]  ;;  %v166_v27 = vld [vmem:[#allocation4 + $0x60] sm:$0xff]  ;;  %v167_v28 = vld [vmem:[#allocation4 + $0x68] sm:$0xff] }
  0x3c   :  { %v509_v26 = vpack.c.bf16 %v165_v25, %v164_v24  ;;  %v512_v29 = vpack.c.bf16 %v167_v28, %v166_v27  ;;  %v168_v30 = vld [vmem:[#allocation4 + $0x70] sm:$0xff]  ;;  %v169_v31 = vld [vmem:[#allocation4 + $0x78] sm:$0xff]  ;;  %v248_v33 = vld [vmem:[#allocation6] sm:$0xff] }
  0x3d   :  { %492 = vmatpush3.bf16.msra.mxu0 %v491_v11  ;;  %v515_v32 = vpack.c.bf16 %v169_v31, %v168_v30  ;;  %v249_v34 = vld [vmem:[#allocation6 + $0x8] sm:$0xff]  ;;  %v250_v35 = vld [vmem:[#allocation6 + $0x10] sm:$0xff]  ;;  %v251_v37 = vld [vmem:[#allocation6 + $0x18] sm:$0xff]  ;;  %v342_v11 = vand.u32 127, %v341_v9 }
  0x3e   :  { %517 = vmatprep.subr.bf16.mxu0 %v628_v0  ;;  %498 = vmatpush3.bf16.msra.mxu1 %v497_v13  ;;  %v518_v36 = vpack.c.bf16 %v249_v34, %v248_v33  ;;  %v521_v38 = vpack.c.bf16 %v251_v37, %v250_v35  ;;  %v252_v39 = vld [vmem:[#allocation6 + $0x20] sm:$0xff]  ;;  %v253_v40 = vld [vmem:[#allocation6 + $0x28] sm:$0xff]  ;;  %v254_v42 = vld [vmem:[#allocation6 + $0x30] sm:$0xff] }
  0x3f   :  { %499 = vmatprep.subr.bf16.mxu1 %v628_v0  ;;  %v524_v41 = vpack.c.bf16 %v253_v40, %v252_v39  ;;  %v255_v43 = vld [vmem:[#allocation6 + $0x38] sm:$0xff]  ;;  %v256_v45 = vld [vmem:[#allocation6 + $0x40] sm:$0xff]  ;;  %v257_v46 = vld [vmem:[#allocation6 + $0x48] sm:$0xff]  ;;  %vm343_vm2 = vcmp.ge.s32.totalorder %v342_v11, 18  ;;  %vm344_vm3 = vcmp.lt.s32.totalorder %v342_v11, 21 }
  0x40   :  { %415 = vmatmul.mubr.msk.f32.vlgmr.msra.gmra.mrb[0].mxu0 %vm79_vm1, %v67_v16  ;;  %v527_v44 = vpack.c.bf16 %v255_v43, %v254_v42  ;;  %v530_v47 = vpack.c.bf16 %v257_v46, %v256_v45  ;;  %v258_v48 = vld [vmem:[#allocation6 + $0x50] sm:$0xff]  ;;  %v259_v49 = vld [vmem:[#allocation6 + $0x58] sm:$0xff]  ;;  %v260_v51 = vld [vmem:[#allocation6 + $0x60] sm:$0xff] }
  0x41   :  { %484 = vmatprep.mubr.msk.f32.mxu0 %vm629_vm0, %v630_v1  ;;  %519 = vmatpush3.bf16.msra.mxu0 %v518_v36  ;;  %v533_v50 = vpack.c.bf16 %v259_v49, %v258_v48  ;;  %v261_v52 = vld [vmem:[#allocation6 + $0x68] sm:$0xff]  ;;  %v362_v54 = vld [vmem:[%s761_s2] ss:$0 sm:$0xff]  ;;  %v262_v59 = vld [vmem:[#allocation6 + $0x70] sm:$0xff] }
  0x42   :  { %501 = vmatpush3.bf16.msra.mxu1 %v500_v17  ;;  %520 = vmatprep.subr.bf16.mxu0 %v628_v0  ;;  %v536_v53 = vpack.c.bf16 %v261_v52, %v260_v51  ;;  %v263_v60 = vld [vmem:[#allocation6 + $0x78] sm:$0xff]  ;;  %v364_v62 = vld [vmem:[%s763_s4] ss:$0 sm:$0xff]  ;;  %vm345_vm4 = vmand %vm343_vm2, %vm344_vm3 }
  0x43   :  { %502 = vmatprep.subr.bf16.mxu1 %v628_v0  ;;  %v539_v61 = vpack.c.bf16 %v263_v60, %v262_v59  ;;  %v365_v3 = vld [vmem:[%s765_s6] ss:$0 sm:$0xff] }
  0x45   :  { %522 = vmatpush3.bf16.msra.mxu0 %v521_v38 }
  0x46   :  { %504 = vmatpush3.bf16.msra.mxu1 %v503_v20  ;;  %523 = vmatprep.subr.bf16.mxu0 %v628_v0 }
  0x47   :  { %505 = vmatprep.subr.bf16.mxu1 %v628_v0 }
  0x49   :  { %525 = vmatpush3.bf16.msra.mxu0 %v524_v41 }
  0x4a   :  { %507 = vmatpush3.bf16.msra.mxu1 %v506_v23  ;;  %526 = vmatprep.subr.bf16.mxu0 %v628_v0 }
  0x4b   :  { %508 = vmatprep.subr.bf16.mxu1 %v628_v0 }
  0x4d   :  { %528 = vmatpush3.bf16.msra.mxu0 %v527_v44 }
  0x4e   :  { %510 = vmatpush3.bf16.msra.mxu1 %v509_v26  ;;  %529 = vmatprep.subr.bf16.mxu0 %v628_v0 }
  0x4f   :  { %511 = vmatprep.subr.bf16.mxu1 %v628_v0 }
  0x51   :  { %531 = vmatpush3.bf16.msra.mxu0 %v530_v47 }
  0x52   :  { %513 = vmatpush3.bf16.msra.mxu1 %v512_v29  ;;  %532 = vmatprep.subr.bf16.mxu0 %v628_v0 }
  0x53   :  { %514 = vmatprep.subr.bf16.mxu1 %v628_v0 }
  0x55   :  { %534 = vmatpush3.bf16.msra.mxu0 %v533_v50 }
  0x56   :  { %516 = vmatpush3.bf16.msra.mxu1 %v515_v32  ;;  %535 = vmatprep.subr.bf16.mxu0 %v628_v0 }
  0x59   :  { %537 = vmatpush3.bf16.msra.mxu0 %v536_v53 }
  0x5a   :  { %538 = vmatprep.subr.bf16.mxu0 %v628_v0 }
  0x5d   :  { %540 = vmatpush3.bf16.msra.mxu0 %v539_v61 }
 0x113   :  { %v149_v55 = vpop.f32.mrb[0].mxu0 }
 0x114   :  { %v150_v56 = vadd.f32 %v362_v54, %v149_v55  ;;  %v416_v57 = vpop.f32.mrb[1].mxu0 }
 0x116   :  { %v153_v58 = vmax.f32 %v150_v56, 0.0 }
 0x118   :  { %450 = vmatmul.mubr.f32.vlgmr.msra.gmra.mrb[0].mxu1 %v153_v58 }
 0x1eb   :  { %v243_v63 = vpop.f32.mrb[0].mxu1 }
 0x1ec   :  { %v244_v1 = vadd.f32 %v364_v62, %v243_v63  ;;  %v451_v0 = vpop.f32.mrb[1].mxu1 }
 0x1ee   :  { %v247_v2 = vmax.f32 %v244_v1, 0.0 }
 0x1f0   :  { %485 = vmatmul.mubr.f32.vlgmr.msra.gmra.mrb[2].mxu0 %v247_v2 }
 0x2c3   :  { %v337_v4 = vpop.f32.mrb[2].mxu0 }
 0x2c4   :  { %v338_v5 = vadd.f32 %v365_v3, %v337_v4  ;;  %v486_v6 = vpop.f32.mrb[3].mxu0 }
 0x2c6   :  { %v366_v7 = vmul.f32 -1.442695, %v338_v5 }
 0x2c8   :  { %549 = vpow2.f32 %v366_v7 }
 0x2d2   :  { %v550_v8 = vpop.eup %549 }
 0x2d3   :  { %v349_v10 = vadd.f32 1.0, %v550_v8 }
 0x2d5   :  { %551 = vrcp.f32 %v349_v10 }
 0x2df   :  { %v552_v12 = vpop.eup %551 }
 0x2e0   :  { %v354_v13 = vsel %vm345_vm4, %v552_v12, %v338_v5 }
 0x2e1   :  { %355 = vst [vmem:[%s766_s7] sm:$0xff] %v354_v13 }
 0x2e2   :  { %360 = vsyncpa [#allocation3], 1 }
 0x2e3   :  { %361 = vsyncpa [#allocation5], 1 }

</bundles_post_ra>
